<compile_context>
chip_gen: v7x
topology: tpu7x:2x2x1
jax: 0.10.0
libtpu: 0.0.40
codegen_flags: <defaults>
</compile_context>

<pallas_src>
import jax
import jax.numpy as jnp
from jax.experimental import pallas as pl
from jax.experimental.pallas import tpu as pltpu


# ------------------------------ fused kernel --------------------------------

def film12_fused_kernel(ctx_ref, inp_ref, wc_ref, chp_ref, wbd_ref, bbd_ref, o_ref):
    # ctx_ref : (Bn, 3, H*W)    context block (Bn batch elements per grid step)
    # inp_ref : (Bn, 64, H*F)   modulated-input block
    # wc_ref  : (64, 3)         1x1 conv weight
    # chp_ref : (64, 4)         packed per-channel params [conv_b, in_w, in_b, prelu_a]
    # wbd_ref : (H*W, 2*H*F)    block-diagonal packed [gamma | beta] FiLM weight
    # bbd_ref : (1, 2*H*F)      tiled [gamma_b | beta_b]
    # o_ref   : (Bn, 64, H*F)
    Bn, Cout, HF = inp_ref.shape
    HW = ctx_ref.shape[-1]

    ctx = ctx_ref[...]                                     # (Bn, 3, HW)
    wc = wc_ref[...]                                       # (64, 3)
    chp = chp_ref[...]                                     # (64, 4)

    # ---- 1x1 conv (K=3) on the VPU: three broadcast FMAs, no MXU latency ----
    y = (wc[None, :, 0:1] * ctx[:, 0:1, :]
         + wc[None, :, 1:2] * ctx[:, 1:2, :]
         + wc[None, :, 2:3] * ctx[:, 2:3, :])              # (Bn, 64, HW)
    y = y + chp[None, :, 0:1]                              # conv bias

    # ---- InstanceNorm2d(64, affine): single-pass stats, biased var, eps=1e-5 ----
    inv_hw = 1.0 / HW
    mean = jnp.sum(y, axis=-1, keepdims=True) * inv_hw
    ex2 = jnp.sum(y * y, axis=-1, keepdims=True) * inv_hw
    var = jnp.maximum(ex2 - mean * mean, 0.0)              # clamp: no NaN from cancellation
    yn = (y - mean) * jax.lax.rsqrt(var + 1e-5)
    yn = yn * chp[None, :, 1:2] + chp[None, :, 2:3]        # affine

    # ---- PReLU(64) ----
    yn = jnp.where(yn >= 0.0, yn, chp[None, :, 3:4] * yn)  # (Bn, 64, HW), stays in vregs

    # ---- FiLM: one block-diagonal matmul for ALL spatial rows + one dense store ----
    yn2 = yn.reshape(Bn * Cout, HW)                        # squeeze for Bn==1; cheap otherwise
    gb = jnp.dot(yn2, wbd_ref[...],
                 preferred_element_type=jnp.float32) + bbd_ref[...]   # (Bn*64, 2*H*F)
    gamma = gb[:, :HF]
    beta = gb[:, HF:]
    x2 = inp_ref[...].reshape(Bn * Cout, HF)
    o_ref[...] = (x2 * gamma + beta).reshape(Bn, Cout, HF)  # single full-tile store


# -------------------------------- wrapper ------------------------------------

def _pick_block_n(N, cout, hf, cin, hw):
    """Batch elements per grid step, sized against VMEM, keeping >=2 grid steps."""
    per_elem = 2 * (2 * cout * hf + cin * hw) * 4          # double-buffered in+out+ctx, f32
    budget = 8 << 20                                        # headroom vs v7x 64 MiB VMEM
    bn = max(1, min(N, budget // max(per_elem, 1)))
    bn = min(bn, max(N // 2, 1))                            # v7x: keep both TensorCores fed
    while N % bn:                                           # grid must tile N exactly
        bn -= 1
    return bn


@jax.jit
def film12_forward(params, inp, context):
    N, Cin, H, W = context.shape                            # Cin == 3
    Cout = params["conv_w"].shape[0]                        # 64
    F = params["gamma_w"].shape[0]                          # feature_size
    assert params["gamma_w"].shape[1] == W                  # input_size == context W
    assert inp.size == N * Cout * H * F

    HW, HF = H * W, H * F

    # free, contiguous reshapes only (no gather / transpose glue)
    ctx3 = context.reshape(N, Cin, HW)
    inp3 = inp.reshape(N, Cout, HF)

    # tiny one-time parameter packing
    wc2 = params["conv_w"].reshape(Cout, Cin)               # 1x1 kernel -> (64, 3)
    chp = jnp.stack([params["conv_b"], params["in_w"],
                     params["in_b"], params["prelu_a"]], axis=1)          # (64, 4)

    # block-diagonal packed FiLM weight (built once): first H*F cols = gamma,
    # last H*F cols = beta, each a block-diag repetition of the (W, F) weight.
    eye_h = jnp.eye(H, dtype=jnp.float32)
    g_bd = jnp.kron(eye_h, params["gamma_w"].T)             # (H*W, H*F)
    b_bd = jnp.kron(eye_h, params["beta_w"].T)              # (H*W, H*F)
    wbd = jnp.concatenate([g_bd, b_bd], axis=1)             # (H*W, 2*H*F)
    bbd = jnp.concatenate([jnp.tile(params["gamma_b"], H),
                           jnp.tile(params["beta_b"], H)]).reshape(1, 2 * HF)

    Bn = _pick_block_n(N, Cout, HF, Cin, HW)
    grid = (N // Bn,)

    out3 = pl.pallas_call(
        film12_fused_kernel,
        out_shape=jax.ShapeDtypeStruct((N, Cout, HF), jnp.float32),
        grid=grid,
        in_specs=[
            pl.BlockSpec((Bn, Cin, HW), lambda n: (n, 0, 0)),
            pl.BlockSpec((Bn, Cout, HF), lambda n: (n, 0, 0)),
            pl.BlockSpec((Cout, Cin), lambda n: (0, 0)),
            pl.BlockSpec((Cout, 4), lambda n: (0, 0)),
            pl.BlockSpec((HW, 2 * HF), lambda n: (0, 0)),
            pl.BlockSpec((1, 2 * HF), lambda n: (0, 0)),
        ],
        out_specs=pl.BlockSpec((Bn, Cout, HF), lambda n: (n, 0, 0)),
        compiler_params=pltpu.CompilerParams(
            dimension_semantics=("parallel",),
            vmem_limit_bytes=32 << 20),
    )(ctx3, inp3, wc2, chp, wbd, bbd)
    return out3.reshape(inp.shape)


# ------------------------- pure-JAX reference (check) -------------------------

def reference(params, inp, context):
    y = jax.lax.conv_general_dilated(
        context, params["conv_w"], window_strides=(1, 1), padding="VALID",
        dimension_numbers=("NCHW", "OIHW", "NCHW"))
    y = y + params["conv_b"][None, :, None, None]
    mean = y.mean(axis=(2, 3), keepdims=True)
    var = ((y - mean) ** 2).mean(axis=(2, 3), keepdims=True)
    y = (y - mean) / jnp.sqrt(var + 1e-5)
    y = y * params["in_w"][None, :, None, None] + params["in_b"][None, :, None, None]
    a = params["prelu_a"][None, :, None, None]
    y = jnp.where(y >= 0, y, a * y)
    ctx2d = y.reshape(-1, y.shape[3])
    gamma = (ctx2d @ params["gamma_w"].T + params["gamma_b"]).reshape(inp.shape)
    beta = (ctx2d @ params["beta_w"].T + params["beta_b"]).reshape(inp.shape)
    return inp * gamma + beta


# ---------------------------------- main --------------------------------------

if __name__ == "__main__":
    key = jax.random.PRNGKey(0)
    ks = jax.random.split(key, 10)

    # module config: input_size = W = 8, feature_size = 16
    N, Cin, H, W = 2, 3, 2, 8
    input_size, feature_size = W, 16

    params = {
        "conv_w":  0.1 * jax.random.normal(ks[0], (64, 3, 1, 1), jnp.float32),
        "conv_b":  0.1 * jax.random.normal(ks[1], (64,), jnp.float32),
        "in_w":    1.0 + 0.1 * jax.random.normal(ks[2], (64,), jnp.float32),
        "in_b":    0.1 * jax.random.normal(ks[3], (64,), jnp.float32),
        "prelu_a": jnp.full((64,), 0.25, jnp.float32),
        "gamma_w": 0.2 * jax.random.normal(ks[4], (feature_size, input_size), jnp.float32),
        "gamma_b": 0.1 * jax.random.normal(ks[5], (feature_size,), jnp.float32),
        "beta_w":  0.2 * jax.random.normal(ks[6], (feature_size, input_size), jnp.float32),
        "beta_b":  0.1 * jax.random.normal(ks[7], (feature_size,), jnp.float32),
    }

    # input must satisfy prod(input.shape) == N*64*H*feature_size
    inp = jax.random.normal(ks[8], (N, 64, H, feature_size), jnp.float32)
    context = jax.random.normal(ks[9], (N, Cin, H, W), jnp.float32)

    out = jax.block_until_ready(film12_forward(params, inp, context))
    ref = jax.block_until_ready(reference(params, inp, context))

    assert out.shape == inp.shape
    assert jnp.allclose(out, ref, rtol=1e-4, atol=1e-4), float(jnp.max(jnp.abs(out - ref)))
    print("KERNEL_OK")
</pallas_src>

<mosaic_0001>
module attributes {stable_mosaic.version = 11 : i64} {
  func.func @film12_fused_kernel(%arg0: i32, %arg1: memref<1x3x16xf32, #tpu.memory_space<vmem>>, %arg2: memref<1x64x32xf32, #tpu.memory_space<vmem>>, %arg3: memref<64x3xf32, #tpu.memory_space<vmem>>, %arg4: memref<64x4xf32, #tpu.memory_space<vmem>>, %arg5: memref<16x64xf32, #tpu.memory_space<vmem>>, %arg6: memref<1x64xf32, #tpu.memory_space<vmem>>, %arg7: memref<1x64x32xf32, #tpu.memory_space<vmem>>) attributes {dimension_semantics = [#tpu.dimension_semantics<parallel>], iteration_bounds = array<i64: 2>, scalar_prefetch = 0 : i64, scratch_operands = 0 : i64, tpu.core_type = #tpu.core_type<tc>, window_params = [{transform_indices = @transform_0, window_bounds = array<i64: 1, 3, 16>}, {transform_indices = @transform_1, window_bounds = array<i64: 1, 64, 32>}, {pipeline_mode = #tpu.pipeline_mode<synchronous>, transform_indices = @transform_2, window_bounds = array<i64: 64, 3>}, {pipeline_mode = #tpu.pipeline_mode<synchronous>, transform_indices = @transform_3, window_bounds = array<i64: 64, 4>}, {pipeline_mode = #tpu.pipeline_mode<synchronous>, transform_indices = @transform_4, window_bounds = array<i64: 16, 64>}, {pipeline_mode = #tpu.pipeline_mode<synchronous>, transform_indices = @transform_5, window_bounds = array<i64: 1, 64>}, {transform_indices = @transform_6, window_bounds = array<i64: 1, 64, 32>}]} {
    %c0 = arith.constant 0 : index
    %c0_0 = arith.constant 0 : index
    %c0_1 = arith.constant 0 : index
    %0 = vector.load %arg1[%c0, %c0_0, %c0_1] : memref<1x3x16xf32, #tpu.memory_space<vmem>>, vector<1x3x16xf32>
    %c0_2 = arith.constant 0 : index
    %c0_3 = arith.constant 0 : index
    %1 = vector.load %arg3[%c0_2, %c0_3] : memref<64x3xf32, #tpu.memory_space<vmem>>, vector<64x3xf32>
    %c0_4 = arith.constant 0 : index
    %c0_5 = arith.constant 0 : index
    %2 = vector.load %arg4[%c0_4, %c0_5] : memref<64x4xf32, #tpu.memory_space<vmem>>, vector<64x4xf32>
    %3 = vector.extract_strided_slice %1 {offsets = [0, 0], sizes = [64, 1], strides = [1, 1]} : vector<64x3xf32> to vector<64x1xf32>
    %4 = vector.shape_cast %3 : vector<64x1xf32> to vector<1x64x1xf32>
    %5 = vector.extract_strided_slice %0 {offsets = [0, 0, 0], sizes = [1, 1, 16], strides = [1, 1, 1]} : vector<1x3x16xf32> to vector<1x1x16xf32>
    %6 = vector.broadcast %4 : vector<1x64x1xf32> to vector<1x64x16xf32>
    %7 = vector.broadcast %5 : vector<1x1x16xf32> to vector<1x64x16xf32>
    %8 = arith.mulf %6, %7 : vector<1x64x16xf32>
    %9 = vector.extract_strided_slice %1 {offsets = [0, 1], sizes = [64, 1], strides = [1, 1]} : vector<64x3xf32> to vector<64x1xf32>
    %10 = vector.shape_cast %9 : vector<64x1xf32> to vector<1x64x1xf32>
    %11 = vector.extract_strided_slice %0 {offsets = [0, 1, 0], sizes = [1, 1, 16], strides = [1, 1, 1]} : vector<1x3x16xf32> to vector<1x1x16xf32>
    %12 = vector.broadcast %10 : vector<1x64x1xf32> to vector<1x64x16xf32>
    %13 = vector.broadcast %11 : vector<1x1x16xf32> to vector<1x64x16xf32>
    %14 = arith.mulf %12, %13 : vector<1x64x16xf32>
    %15 = arith.addf %8, %14 : vector<1x64x16xf32>
    %16 = vector.extract_strided_slice %1 {offsets = [0, 2], sizes = [64, 1], strides = [1, 1]} : vector<64x3xf32> to vector<64x1xf32>
    %17 = vector.shape_cast %16 : vector<64x1xf32> to vector<1x64x1xf32>
    %18 = vector.extract_strided_slice %0 {offsets = [0, 2, 0], sizes = [1, 1, 16], strides = [1, 1, 1]} : vector<1x3x16xf32> to vector<1x1x16xf32>
    %19 = vector.broadcast %17 : vector<1x64x1xf32> to vector<1x64x16xf32>
    %20 = vector.broadcast %18 : vector<1x1x16xf32> to vector<1x64x16xf32>
    %21 = arith.mulf %19, %20 : vector<1x64x16xf32>
    %22 = arith.addf %15, %21 : vector<1x64x16xf32>
    %23 = vector.extract_strided_slice %2 {offsets = [0, 0], sizes = [64, 1], strides = [1, 1]} : vector<64x4xf32> to vector<64x1xf32>
    %24 = vector.shape_cast %23 : vector<64x1xf32> to vector<1x64x1xf32>
    %25 = vector.broadcast %24 : vector<1x64x1xf32> to vector<1x64x16xf32>
    %26 = arith.addf %22, %25 : vector<1x64x16xf32>
    %cst = arith.constant dense<0.000000e+00> : vector<1x64xf32>
    %27 = vector.multi_reduction <add>, %26, %cst [2] : vector<1x64x16xf32> to vector<1x64xf32>
    %28 = vector.shape_cast %27 : vector<1x64xf32> to vector<1x64x1xf32>
    %cst_6 = arith.constant 6.250000e-02 : f32
    %29 = vector.broadcast %cst_6 : f32 to vector<1x64x1xf32>
    %30 = arith.mulf %28, %29 : vector<1x64x1xf32>
    %31 = arith.mulf %26, %26 : vector<1x64x16xf32>
    %cst_7 = arith.constant dense<0.000000e+00> : vector<1x64xf32>
    %32 = vector.multi_reduction <add>, %31, %cst_7 [2] : vector<1x64x16xf32> to vector<1x64xf32>
    %33 = vector.shape_cast %32 : vector<1x64xf32> to vector<1x64x1xf32>
    %cst_8 = arith.constant 6.250000e-02 : f32
    %34 = vector.broadcast %cst_8 : f32 to vector<1x64x1xf32>
    %35 = arith.mulf %33, %34 : vector<1x64x1xf32>
    %36 = arith.mulf %30, %30 : vector<1x64x1xf32>
    %37 = arith.subf %35, %36 : vector<1x64x1xf32>
    %cst_9 = arith.constant 0.000000e+00 : f32
    %38 = vector.broadcast %cst_9 : f32 to vector<1x64x1xf32>
    %39 = arith.maximumf %37, %38 : vector<1x64x1xf32>
    %40 = vector.broadcast %30 : vector<1x64x1xf32> to vector<1x64x16xf32>
    %41 = arith.subf %26, %40 : vector<1x64x16xf32>
    %cst_10 = arith.constant 9.99999974E-6 : f32
    %42 = vector.broadcast %cst_10 : f32 to vector<1x64x1xf32>
    %43 = arith.addf %39, %42 : vector<1x64x1xf32>
    %44 = math.rsqrt %43 : vector<1x64x1xf32>
    %45 = vector.broadcast %44 : vector<1x64x1xf32> to vector<1x64x16xf32>
    %46 = arith.mulf %41, %45 : vector<1x64x16xf32>
    %47 = vector.extract_strided_slice %2 {offsets = [0, 1], sizes = [64, 1], strides = [1, 1]} : vector<64x4xf32> to vector<64x1xf32>
    %48 = vector.shape_cast %47 : vector<64x1xf32> to vector<1x64x1xf32>
    %49 = vector.broadcast %48 : vector<1x64x1xf32> to vector<1x64x16xf32>
    %50 = arith.mulf %46, %49 : vector<1x64x16xf32>
    %51 = vector.extract_strided_slice %2 {offsets = [0, 2], sizes = [64, 1], strides = [1, 1]} : vector<64x4xf32> to vector<64x1xf32>
    %52 = vector.shape_cast %51 : vector<64x1xf32> to vector<1x64x1xf32>
    %53 = vector.broadcast %52 : vector<1x64x1xf32> to vector<1x64x16xf32>
    %54 = arith.addf %50, %53 : vector<1x64x16xf32>
    %cst_11 = arith.constant 0.000000e+00 : f32
    %55 = vector.broadcast %cst_11 : f32 to vector<1x64x16xf32>
    %56 = arith.cmpf oge, %54, %55 : vector<1x64x16xf32>
    %57 = vector.extract_strided_slice %2 {offsets = [0, 3], sizes = [64, 1], strides = [1, 1]} : vector<64x4xf32> to vector<64x1xf32>
    %58 = vector.shape_cast %57 : vector<64x1xf32> to vector<1x64x1xf32>
    %59 = vector.broadcast %58 : vector<1x64x1xf32> to vector<1x64x16xf32>
    %60 = arith.mulf %59, %54 : vector<1x64x16xf32>
    %61 = arith.select %56, %54, %60 : vector<1x64x16xi1>, vector<1x64x16xf32>
    %62 = vector.shape_cast %61 : vector<1x64x16xf32> to vector<64x16xf32>
    %c0_12 = arith.constant 0 : index
    %c0_13 = arith.constant 0 : index
    %63 = vector.load %arg5[%c0_12, %c0_13] : memref<16x64xf32, #tpu.memory_space<vmem>>, vector<16x64xf32>
    %cst_14 = arith.constant dense<0.000000e+00> : vector<64x64xf32>
    %64 = tpu.matmul %62, %63, %cst_14 {dimension_numbers = #tpu.dot_dimension_numbers<[1], [0], [0], [1], [0, 0, 1, 1], [], []>} : vector<64x16xf32>, vector<16x64xf32>, vector<64x64xf32> -> vector<64x64xf32>
    %c0_15 = arith.constant 0 : index
    %c0_16 = arith.constant 0 : index
    %65 = vector.load %arg6[%c0_15, %c0_16] : memref<1x64xf32, #tpu.memory_space<vmem>>, vector<1x64xf32>
    %66 = vector.broadcast %65 : vector<1x64xf32> to vector<64x64xf32>
    %67 = arith.addf %64, %66 : vector<64x64xf32>
    %68 = vector.extract_strided_slice %67 {offsets = [0, 0], sizes = [64, 32], strides = [1, 1]} : vector<64x64xf32> to vector<64x32xf32>
    %69 = vector.extract_strided_slice %67 {offsets = [0, 32], sizes = [64, 32], strides = [1, 1]} : vector<64x64xf32> to vector<64x32xf32>
    %c0_17 = arith.constant 0 : index
    %c0_18 = arith.constant 0 : index
    %c0_19 = arith.constant 0 : index
    %70 = vector.load %arg2[%c0_17, %c0_18, %c0_19] : memref<1x64x32xf32, #tpu.memory_space<vmem>>, vector<1x64x32xf32>
    %71 = vector.shape_cast %70 : vector<1x64x32xf32> to vector<64x32xf32>
    %72 = arith.mulf %71, %68 : vector<64x32xf32>
    %73 = arith.addf %72, %69 : vector<64x32xf32>
    %74 = vector.shape_cast %73 : vector<64x32xf32> to vector<1x64x32xf32>
    %c0_20 = arith.constant 0 : index
    %c0_21 = arith.constant 0 : index
    %c0_22 = arith.constant 0 : index
    %75 = vector.load %arg7[%c0_20, %c0_21, %c0_22] : memref<1x64x32xf32, #tpu.memory_space<vmem>>, vector<1x64x32xf32>
    tpu.vector_store %arg7[%c0_20, %c0_21, %c0_22], %74 {strides = array<i32>} : memref<1x64x32xf32, #tpu.memory_space<vmem>>, vector<1x64x32xf32>,
    return
  }
  func.func @transform_0(%arg0: i32) -> (i32, i32, i32) {
    %c0_i32 = arith.constant 0 : i32
    %c0_i32_0 = arith.constant 0 : i32
    %c0_i32_1 = arith.constant 0 : i32
    return %arg0, %c0_i32, %c0_i32_0 : i32, i32, i32
  }
  func.func @transform_1(%arg0: i32) -> (i32, i32, i32) {
    %c0_i32 = arith.constant 0 : i32
    %c0_i32_0 = arith.constant 0 : i32
    %c0_i32_1 = arith.constant 0 : i32
    return %arg0, %c0_i32, %c0_i32_0 : i32, i32, i32
  }
  func.func @transform_2(%arg0: i32) -> (i32, i32) {
    %c0_i32 = arith.constant 0 : i32
    %c0_i32_0 = arith.constant 0 : i32
    %c0_i32_1 = arith.constant 0 : i32
    return %c0_i32, %c0_i32_0 : i32, i32
  }
  func.func @transform_3(%arg0: i32) -> (i32, i32) {
    %c0_i32 = arith.constant 0 : i32
    %c0_i32_0 = arith.constant 0 : i32
    %c0_i32_1 = arith.constant 0 : i32
    return %c0_i32, %c0_i32_0 : i32, i32
  }
  func.func @transform_4(%arg0: i32) -> (i32, i32) {
    %c0_i32 = arith.constant 0 : i32
    %c0_i32_0 = arith.constant 0 : i32
    %c0_i32_1 = arith.constant 0 : i32
    return %c0_i32, %c0_i32_0 : i32, i32
  }
  func.func @transform_5(%arg0: i32) -> (i32, i32) {
    %c0_i32 = arith.constant 0 : i32
    %c0_i32_0 = arith.constant 0 : i32
    %c0_i32_1 = arith.constant 0 : i32
    return %c0_i32, %c0_i32_0 : i32, i32
  }
  func.func @transform_6(%arg0: i32) -> (i32, i32, i32) {
    %c0_i32 = arith.constant 0 : i32
    %c0_i32_0 = arith.constant 0 : i32
    %c0_i32_1 = arith.constant 0 : i32
    return %arg0, %c0_i32, %c0_i32_0 : i32, i32, i32
  }
}

</mosaic_0001>

<bundles_post_ra>
// kernel: tile.18
= control target key start
LH: loop header
LB: loop body
LE: loop exit
PB: predicated region body
PF: predicated region fallthrough
CT: control target
= control target key end

     0   :  { %s22_s0 = inlined_call_operand.vmem [shape: f32[16], index: 0, kind: input, shape index: {}]   ;;  %s23_s1 = inlined_call_operand.vmem [shape: f32[2,16], index: 1, kind: output, shape index: {}]  }
   0x1   :  { %v4_v0 = vld [vmem:[%s22_s0] ss:$0 sm:$0xff] }
   0x2   :  { %5 = vst [vmem:[%s23_s1] sm:$0x3] %v4_v0 }

// kernel: tile.19
= control target key start
LH: loop header
LB: loop body
LE: loop exit
PB: predicated region body
PF: predicated region fallthrough
CT: control target
= control target key end

     0   :  { %vm7_vm0 = vcmask 130048   ;;  %vm13_vm1 = vcmask 261248   ;;  %s39_s0 = inlined_call_operand.vmem [shape: f32[2,16], index: 0, kind: input, shape index: {}]   ;;  %s40_s1 = inlined_call_operand.vmem [shape: f32[32], index: 1, kind: output, shape index: {}]  }
   0x1   :  { %v4_v0 = vld [vmem:[%s39_s0] sm:$0x3]  ;;  %s22_s0 = smov 16  }
   0x2   :  { %5 = vst [vmem:[#allocation1] sm:$0x3] %v4_v0 }
   0x9   :  { %v10_v1 = vld [vmem:[#allocation1 + $0x1] sm:$0x1]   ;;  %v6_v2 = vld [vmem:[#allocation1] sm:$0x1]  }
   0xa   :  { %11 = vrot.lane.b32.xlu0 %v10_v1, %s22_s0  ;;  %8 = vst.msk [vmem:[#allocation0] sm:$0x1] %vm7_vm0, %v6_v2  }
  0x7c   :  { %v12_v3 = vpop.permute.xlu0 %11  }
  0x7d   :  { %14 = vst.msk [vmem:[#allocation0] sm:$0x1] %vm13_vm1, %v12_v3  }
  0x84   :  { %v18_v4 = vld [vmem:[#allocation0] sm:$0x1] }
  0x85   :  { %20 = vst [vmem:[%s40_s1] sm:$0x1] %v18_v4 }

// kernel: film12_forward.1
= control target key start
LH: loop header
LB: loop body
LE: loop exit
PB: predicated region body
PF: predicated region fallthrough
CT: control target
= control target key end

     0   :  { %s1182_s21 = smov 0   ;;  %s1526_s0 = inlined_call_operand.vmem [shape: f32[2,3,16], index: 0, kind: input, shape index: {}]   ;;  %s1527_s1 = inlined_call_operand.vmem [shape: f32[2,64,32], index: 1, kind: input, shape index: {}]   ;;  %s1528_s2 = inlined_call_operand.vmem [shape: f32[64,3], index: 2, kind: input, shape index: {}]   ;;  %s1529_s3 = inlined_call_operand.vmem [shape: f32[64,4], index: 3, kind: input, shape index: {}]   ;;  %s1530_s4 = inlined_call_operand.vmem [shape: f32[16,64], index: 4, kind: input, shape index: {}]   ;;  %s1531_s5 = inlined_call_operand.vmem [shape: f32[1,64], index: 5, kind: input, shape index: {}]   ;;  %s1532_s6 = inlined_call_operand.vmem [shape: f32[2,64,32], index: 6, kind: output, shape index: {}]  }
   0x1 LB: > { %s1025_s22 = sadd.s32 4294967295, %s1140_s21   ;;  %p1029_p0 = scmp.ge.s32.totalorder %s1140_s21, 1  ;;  %s1140_s21 = sphi %s1182_s21, %s16_s21  }
   0x2   : > { %p221_p1 = scmp.lt.s32.totalorder %s1140_s21, 3 }
   0x4   : > { %p222_p2 = pnand %p1029_p0, %p221_p1 }
   0x5   : > { %v274_v0 = vld [vmem:[%s1528_s2 + $0x20] sm:$0xff] (!%p222_p2)  ;;  %v1142_v2 = vmov (!%p222_p2), 2   ;;  %v1143_v3 = vmov (!%p222_p2), 1   ;;  %v272_v4 = vld [vmem:[%s1528_s2 + $0x10] sm:$0xff] (!%p222_p2)  ;;  %v275_v5 = vld [vmem:[%s1528_s2 + $0x28] sm:$0xff] (!%p222_p2)  ;;  %v1144_v6 = vmov (!%p222_p2), 0   ;;  %v326_v21 = vlaneseq (!%p222_p2) }
   0x6   : > { %225 = sbr.rel (%p222_p2) target bundleno = 780 (0x30c), region = 44  ;;  %v270_v1 = vld [vmem:[%s1528_s2] sm:$0xff] (!%p222_p2)  ;;  %1097 = vset.pattern.permute.xlu0 (!%p222_p2), %v1142_v2  ;;  %1093 = vset.pattern.permute.xlu1 (!%p222_p2), %v1143_v3  ;;  %v271_v7 = vld [vmem:[%s1528_s2 + $0x8] sm:$0xff] (!%p222_p2)  ;;  %v276_v10 = vld [vmem:[%s1528_s2 + $0x30] sm:$0xff] (!%p222_p2)  ;;  %p255_p3 = scmp.lt.s32.totalorder (!%p222_p2), %s1025_s22, 1  ;;  %vm490_vm0 = vcmask (!%p222_p2), 130048  }
   0x7   : > { %407 = vperm.xlu0 (!%p222_p2), %1097, %v274_v0   ;;  %339 = vperm.xlu1 (!%p222_p2), %1093, %v270_v1   ;;  %v1212_v8 = vld [vmem:[%s1529_s3 + $0x20] sm:$0xff] (!%p222_p2)  ;;  %v1218_v9 = vld [vmem:[%s1529_s3 + $0x8] sm:$0xff] (!%p222_p2)  ;;  %v1227_v11 = vld [vmem:[%s1529_s3 + $0x10] sm:$0xff] (!%p222_p2)  ;;  %v327_v24 = vshrl.u32 (!%p222_p2), %v326_v21, 7  ;;  %s1146_s19 = smov (!%p222_p2), 96   ;;  %vm949_vm9 = vcmask (!%p222_p2), 261120  }
   0x8   : > { %v1233_v12 = vld [vmem:[%s1529_s3 + $0x18] sm:$0xff] (!%p222_p2)  ;;  %v1249_v15 = vld [vmem:[%s1529_s3] sm:$0xff] (!%p222_p2)  ;;  %v1256_v16 = vld [vmem:[%s1529_s3 + $0x28] sm:$0xff] (!%p222_p2) }
   0x9   : > { %v273_v13 = vld [vmem:[%s1528_s2 + $0x18] sm:$0xff] (!%p222_p2)  ;;  %v1262_v17 = vld [vmem:[%s1529_s3 + $0x30] sm:$0xff] (!%p222_p2)  ;;  %v328_v27 = vsub.s32 (!%p222_p2), 0, %v327_v24  ;;  %v372_v28 = vsub.s32 (!%p222_p2), 1, %v327_v24  ;;  %v424_v29 = vsub.s32 (!%p222_p2), 2, %v327_v24 }
   0xa   : > { %v277_v14 = vld [vmem:[%s1528_s2 + $0x38] sm:$0xff] (!%p222_p2) }
   0xb   : > { %399 = vperm.xlu0 (!%p222_p2), %1097, %v272_v4   ;;  %355 = vperm.xlu1 (!%p222_p2), %1093, %v274_v0   ;;  %v1268_v18 = vld [vmem:[%s1529_s3 + $0x38] sm:$0xff] (!%p222_p2) }
   0xd   : > { %s1534_s22 = smov (!%p255_p3, %s1025_s22), 1 }
   0xe   : > { %s1030_s9 = sshll.u32 %s1534_s22, 2  ;;  %s1046_s20 = sshll.u32 %s1534_s22, 6 }
   0xf   : > { %1102 = vset.pattern.permute.xlu0 %v1144_v6  ;;  %1094 = vset.pattern.permute.xlu1 %v1144_v6  ;;  %s258_s12 = scalar_lea.vmem %s1526_s0, %s1030_s9  ;;  %s1492_s25 = scalar_lea.vmem %s1527_s1, %s1046_s20 }
  0x10   : > { %288 = vperm.xlu0 %1102, %v270_v1   ;;  %313 = vperm.xlu1 %1094, %v275_v5   ;;  %v269_v30 = vld [vmem:[%s258_s12] sm:$0x7]  ;;  %s1499_s28 = scalar_lea.vmem %s1532_s6, %s1046_s20 }
  0x11   : > { %v1284_v32 = vrot.slane %v269_v30, %v328_v27  ;;  %v1286_v34 = vrot.slane %v269_v30, %v372_v28  ;;  %v1288_v35 = vrot.slane %v269_v30, %v424_v29 }
  0x14   : > { %308 = vperm.xlu0 %1102, %v274_v0   ;;  %1095 = vset.pattern.permute.xlu1 %v1143_v3 }
  0x15   : > { %359 = vperm.xlu1 %1095, %v275_v5  }
  0x18   : > { %293 = vperm.xlu0 %1102, %v271_v7  }
  0x19   : > { %1096 = vset.pattern.permute.xlu1 %v1142_v2 }
  0x1a   : > { %391 = vperm.xlu1 %1096, %v270_v1  }
  0x1c   : > { %298 = vperm.xlu0 %1102, %v272_v4  }
  0x1e   : > { %395 = vperm.xlu1 %1096, %v271_v7  }
  0x20   : > { %464 = vperm.xlu0 %1102, %v1212_v8  }
  0x22   : > { %411 = vperm.xlu1 %1096, %v275_v5  }
  0x24   : > { %449 = vperm.xlu0 %1102, %v1218_v9  }
  0x26   : > { %1098 = vset.pattern.permute.xlu1 %v1144_v6 }
  0x27   : > { %318 = vperm.xlu1 %1098, %v276_v10  }
  0x28   : > { %454 = vperm.xlu0 %1102, %v1227_v11  }
  0x2b   : > { %1099 = vset.pattern.permute.xlu1 %v1143_v3 }
  0x2c   : > { %459 = vperm.xlu0 %1102, %v1233_v12   ;;  %347 = vperm.xlu1 %1099, %v272_v4  }
  0x30   : > { %1107 = vset.pattern.permute.xlu0 %v1143_v3  ;;  %1100 = vset.pattern.permute.xlu1 %v1144_v6 }
  0x31   : > { %343 = vperm.xlu0 %1107, %v271_v7   ;;  %303 = vperm.xlu1 %1100, %v273_v13  }
  0x35   : > { %363 = vperm.xlu0 %1107, %v276_v10   ;;  %323 = vperm.xlu1 %1100, %v277_v14  }
  0x39   : > { %351 = vperm.xlu0 %1107, %v273_v13   ;;  %1101 = vset.pattern.permute.xlu1 %v1143_v3 }
  0x3a   : > { %367 = vperm.xlu1 %1101, %v277_v14  }
  0x3e   : > { %1103 = vset.pattern.permute.xlu1 %v1142_v2 }
  0x3f   : > { %415 = vperm.xlu1 %1103, %v276_v10  }
  0x43   : > { %1104 = vset.pattern.permute.xlu1 %v1144_v6 }
  0x44   : > { %444 = vperm.xlu1 %1104, %v1249_v15  }
  0x48   : > { %1105 = vset.pattern.permute.xlu1 %v1142_v2 }
  0x49   : > { %403 = vperm.xlu1 %1105, %v273_v13  }
  0x4d   : > { %419 = vperm.xlu1 %1105, %v277_v14  }
  0x51   : > { %1106 = vset.pattern.permute.xlu1 %v1144_v6 }
  0x52   : > { %469 = vperm.xlu1 %1106, %v1256_v16  }
  0x56   : > { %474 = vperm.xlu1 %1106, %v1262_v17  }
  0x5a   : > { %479 = vperm.xlu1 %1106, %v1268_v18  }
  0x5e   : > { %1108 = vset.pattern.permute.xlu1 %v1143_v3 }
  0x86   : > { %v340_v19 = vpop.permute.xlu1 %339  ;;  %v408_v20 = vpop.permute.xlu0 %407 }
  0x87   : > { %v430_v40 = vmul.f32 %v1288_v35, %v408_v20  ;;  %v374_v7 = vmul.f32 %v1286_v34, %v340_v19 }
  0x8a   : > { %v356_v22 = vpop.permute.xlu1 %355  ;;  %v400_v23 = vpop.permute.xlu0 %399 }
  0x8b   : > { %v378_v38 = vmul.f32 %v1286_v34, %v356_v22  ;;  %v428_v55 = vmul.f32 %v1288_v35, %v400_v23 }
  0x8f   : > { %v289_v25 = vpop.permute.xlu0 %288  ;;  %v1279_v26 = vpop.permute.xlu1 %313 }
  0x90   : > { %v330_v4 = vmul.f32 %v1284_v32, %v289_v25 }
  0x92   : > { %v382_v20 = vadd.f32 %v374_v7, %v330_v4 }
  0x93   : > { %v309_v31 = vpop.permute.xlu0 %308 }
  0x94   : > { %v360_v33 = vpop.permute.xlu1 %359  ;;  %v334_v36 = vmul.f32 %v1284_v32, %v309_v31 }
  0x96   : > { %v386_v41 = vadd.f32 %v378_v38, %v334_v36  ;;  %v379_v38 = vmul.f32 %v1286_v34, %v360_v33 }
  0x97   : > { %v294_v37 = vpop.permute.xlu0 %293 }
  0x98   : > { %v438_v44 = vadd.f32 %v430_v40, %v386_v41  ;;  %v331_v5 = vmul.f32 %v1284_v32, %v294_v37  ;;  %v335_v41 = vmul.f32 %v1284_v32, %v1279_v26 }
  0x99   : > { %v392_v39 = vpop.permute.xlu1 %391 }
  0x9a   : > { %v426_v10 = vmul.f32 %v1288_v35, %v392_v39 }
  0x9b   : > { %v299_v42 = vpop.permute.xlu0 %298 }
  0x9c   : > { %v332_v53 = vmul.f32 %v1284_v32, %v299_v42  ;;  %v434_v24 = vadd.f32 %v426_v10, %v382_v20 }
  0x9d   : > { %v396_v43 = vpop.permute.xlu1 %395 }
  0x9e   : > { %v427_v21 = vmul.f32 %v1288_v35, %v396_v43 }
  0x9f   : > { %v465_v45 = vpop.permute.xlu0 %464 }
  0xa0   : > { %v1293_v46 = vadd.f32 %v465_v45, %v438_v44  ;;  %v387_v45 = vadd.f32 %v379_v38, %v335_v41 }
  0xa1   : > { %v412_v47 = vpop.permute.xlu1 %411 }
  0xa2   : > { %v503_v48 = vsel %vm490_vm0, %v1293_v46, 0.0  ;;  %v431_v42 = vmul.f32 %v1288_v35, %v412_v47 }
  0xa3   : > { %504 = vadd.xlane.f32.xlu1 %v503_v48  ;;  %v450_v49 = vpop.permute.xlu0 %449 }
  0xa4   : > { %v439_v26 = vadd.f32 %v431_v42, %v387_v45 }
  0xa6   : > { %v319_v50 = vpop.permute.xlu1 %318 }
  0xa7   : > { %v455_v51 = vpop.permute.xlu0 %454 }
  0xab   : > { %v348_v52 = vpop.permute.xlu1 %347  ;;  %v460_v57 = vpop.permute.xlu0 %459 }
  0xac   : > { %v376_v54 = vmul.f32 %v1286_v34, %v348_v52 }
  0xae   : > { %v384_v56 = vadd.f32 %v376_v54, %v332_v53 }
  0xb0   : > { %v436_v58 = vadd.f32 %v428_v55, %v384_v56  ;;  %v304_v59 = vpop.permute.xlu1 %303  ;;  %v344_v63 = vpop.permute.xlu0 %343 }
  0xb1   : > { %v375_v1 = vmul.f32 %v1286_v34, %v344_v63  ;;  %v333_v19 = vmul.f32 %v1284_v32, %v304_v59 }
  0xb2   : > { %v1300_v60 = vadd.f32 %v455_v51, %v436_v58  ;;  %v336_v51 = vmul.f32 %v1284_v32, %v319_v50 }
  0xb3   : > { %v383_v13 = vadd.f32 %v375_v1, %v331_v5 }
  0xb4   : > { %v324_v61 = vpop.permute.xlu1 %323  ;;  %v497_v62 = vsel %vm490_vm0, %v1300_v60, 0.0  ;;  %v364_v6 = vpop.permute.xlu0 %363  ;;  %v525_v4 = vmul.f32 %v1300_v60, %v1300_v60 }
  0xb5   : > { %498 = vadd.xlane.f32.xlu1 %v497_v62  ;;  %v435_v22 = vadd.f32 %v427_v21, %v383_v13  ;;  %v380_v48 = vmul.f32 %v1286_v34, %v364_v6  ;;  %v337_v58 = vmul.f32 %v1284_v32, %v324_v61  ;;  %v527_v13 = vmul.f32 %v1293_v46, %v1293_v46 }
  0xb6   : > { %v537_v6 = vsel %vm490_vm0, %v525_v4, 0.0 }
  0xb7   : > { %v1315_v30 = vadd.f32 %v450_v49, %v435_v22  ;;  %v388_v47 = vadd.f32 %v380_v48, %v336_v51  ;;  %v543_v20 = vsel %vm490_vm0, %v527_v13, 0.0 }
  0xb8   : > { %v352_v23 = vpop.permute.xlu0 %351 }
  0xb9   : > { %v368_v0 = vpop.permute.xlu1 %367  ;;  %v377_v25 = vmul.f32 %v1286_v34, %v352_v23  ;;  %v494_v39 = vsel %vm490_vm0, %v1315_v30, 0.0 }
  0xba   : > { %v381_v54 = vmul.f32 %v1286_v34, %v368_v0 }
  0xbb   : > { %v385_v36 = vadd.f32 %v377_v25, %v333_v19  ;;  %v755_v19 = vld [vmem:[%s1530_s4] sm:$0xff] }
  0xbc   : > { %v389_v1 = vadd.f32 %v381_v54, %v337_v58 }
  0xbe   : > { %v416_v14 = vpop.permute.xlu1 %415 }
  0xbf   : > { %v432_v52 = vmul.f32 %v1288_v35, %v416_v14 }
  0xc1   : > { %v440_v50 = vadd.f32 %v432_v52, %v388_v47 }
  0xc3   : > { %v445_v27 = vpop.permute.xlu1 %444 }
  0xc4   : > { %v1310_v28 = vadd.f32 %v445_v27, %v434_v24 }
  0xc6   : > { %v491_v29 = vsel %vm490_vm0, %v1310_v28, 0.0  ;;  %v523_v33 = vmul.f32 %v1310_v28, %v1310_v28 }
  0xc7   : > { %492 = vadd.xlane.f32.xlu0 %v491_v29  ;;  %v1145_v29 = vmov 3  }
  0xc8   : > { %v404_v31 = vpop.permute.xlu1 %403  ;;  %v531_v56 = vsel %vm490_vm0, %v523_v33, 0.0 }
  0xc9   : > { %v429_v37 = vmul.f32 %v1288_v35, %v404_v31  ;;  %v756_v31 = vld [vmem:[%s1530_s4 + $0x8] sm:$0xff] }
  0xcb   : > { %v437_v40 = vadd.f32 %v429_v37, %v385_v36  ;;  %495 = vadd.xlane.f32.xlu0 %v494_v39  ;;  %v1074_v36 = vpack.c.bf16 %v756_v31, %v755_v19 }
  0xcc   : > { %v420_v43 = vpop.permute.xlu1 %419 }
  0xcd   : > { %v1325_v44 = vadd.f32 %v460_v57, %v437_v40  ;;  %v524_v57 = vmul.f32 %v1315_v30, %v1315_v30  ;;  %v433_v59 = vmul.f32 %v1288_v35, %v420_v43  ;;  %1075 = vmatprep.subr.bf16.mxu0 %v1074_v36  ;;  %1078 = vmatprep.subr.bf16.mxu1 %v1074_v36 }
  0xce   : > { %1077 = vmatpush3.bf16.msra.mxu0 %v1074_v36  ;;  %1079 = vmatpush3.bf16.msra.mxu1 %v1074_v36 }
  0xcf   : > { %v500_v49 = vsel %vm490_vm0, %v1325_v44, 0.0  ;;  %v534_v0 = vsel %vm490_vm0, %v524_v57, 0.0  ;;  %v441_v5 = vadd.f32 %v433_v59, %v389_v1  ;;  %v526_v7 = vmul.f32 %v1325_v44, %v1325_v44 }
  0xd0   : > { %501 = vadd.xlane.f32.xlu1 %v500_v49 }
  0xd1   : > { %v470_v53 = vpop.permute.xlu1 %469  ;;  %v540_v14 = vsel %vm490_vm0, %v526_v7, 0.0 }
  0xd2   : > { %v1335_v55 = vadd.f32 %v470_v53, %v439_v26 }
  0xd4   : > { %532 = vadd.xlane.f32.xlu1 %v531_v56  ;;  %v506_v62 = vsel %vm490_vm0, %v1335_v55, 0.0  ;;  %v528_v21 = vmul.f32 %v1335_v55, %v1335_v55 }
  0xd5   : > { %v475_v63 = vpop.permute.xlu1 %474  ;;  %507 = vadd.xlane.f32.xlu0 %v506_v62 }
  0xd6   : > { %v1344_v34 = vadd.f32 %v475_v63, %v440_v50  ;;  %v546_v22 = vsel %vm490_vm0, %v528_v21, 0.0 }
  0xd8   : > { %535 = vadd.xlane.f32.xlu1 %v534_v0  ;;  %v509_v32 = vsel %vm490_vm0, %v1344_v34, 0.0  ;;  %v529_v23 = vmul.f32 %v1344_v34, %v1344_v34 }
  0xd9   : > { %v480_v35 = vpop.permute.xlu1 %479  ;;  %510 = vadd.xlane.f32.xlu0 %v509_v32 }
  0xda   : > { %v1351_v61 = vadd.f32 %v480_v35, %v441_v5  ;;  %v549_v24 = vsel %vm490_vm0, %v529_v23, 0.0 }
  0xdc   : > { %538 = vadd.xlane.f32.xlu1 %v537_v6  ;;  %v512_v10 = vsel %vm490_vm0, %v1351_v61, 0.0  ;;  %v530_v27 = vmul.f32 %v1351_v61, %v1351_v61 }
  0xdd   : > { %513 = vadd.xlane.f32.xlu0 %v512_v10 }
  0xde   : > { %v552_v25 = vsel %vm490_vm0, %v530_v27, 0.0 }
  0xe0   : > { %541 = vadd.xlane.f32.xlu1 %v540_v14 }
  0xe1   : > { %544 = vadd.xlane.f32.xlu0 %v543_v20 }
  0xe5   : > { %547 = vadd.xlane.f32.xlu0 %v546_v22 }
  0xe9   : > { %550 = vadd.xlane.f32.xlu0 %v549_v24 }
  0xed   : > { %553 = vadd.xlane.f32.xlu0 %v552_v25 }
  0xf1   : > { %620 = vperm.xlu1 %1108, %v1249_v15  }
  0xf5   : > { %624 = vperm.xlu1 %1108, %v1218_v9  }
  0xf9   : > { %640 = vperm.xlu1 %1108, %v1256_v16  }
  0xfd   : > { %1109 = vset.pattern.permute.xlu1 %v1142_v2 }
  0xfe   : > { %660 = vperm.xlu1 %1109, %v1249_v15  }
 0x102   : > { %676 = vperm.xlu1 %1109, %v1212_v8  }
 0x103   : > { %636 = vperm.xlu0 %1107, %v1212_v8  }
 0x106   : > { %664 = vperm.xlu1 %1109, %v1218_v9  }
 0x107   : > { %648 = vperm.xlu0 %1107, %v1268_v18  }
 0x10a   : > { %680 = vperm.xlu1 %1109, %v1256_v16  }
 0x10b   : > { %1114 = vset.pattern.permute.xlu0 %v1142_v2 }
 0x10c   : > { %668 = vperm.xlu0 %1114, %v1227_v11  }
 0x10e   : > { %1110 = vset.pattern.permute.xlu1 %v1143_v3 }
 0x10f   : > { %628 = vperm.xlu1 %1110, %v1227_v11  }
 0x110   : > { %688 = vperm.xlu0 %1114, %v1268_v18  }
 0x113   : > { %644 = vperm.xlu1 %1110, %v1262_v17  }
 0x114   : > { %1116 = vset.pattern.permute.xlu0 %v1145_v29 }
 0x115   : > { %708 = vperm.xlu0 %1116, %v1249_v15  }
 0x117   : > { %1111 = vset.pattern.permute.xlu1 %v1145_v29 }
 0x118   : > { %724 = vperm.xlu1 %1111, %v1212_v8  }
 0x119   : > { %732 = vperm.xlu0 %1116, %v1262_v17  }
 0x11c   : > { %1112 = vset.pattern.permute.xlu1 %v1143_v3 }
 0x11d   : > { %632 = vperm.xlu1 %1112, %v1233_v12  }
 0x121   : > { %1113 = vset.pattern.permute.xlu1 %v1145_v29 }
 0x122   : > { %712 = vperm.xlu1 %1113, %v1218_v9  }
 0x126   : > { %728 = vperm.xlu1 %1113, %v1256_v16  }
 0x12a   : > { %1115 = vset.pattern.permute.xlu1 %v1142_v2 }
 0x12b   : > { %684 = vperm.xlu1 %1115, %v1262_v17  }
 0x12f   : > { %672 = vperm.xlu1 %1115, %v1233_v12  }
 0x130   : > { %v505_v3 = vpop.xlane.xlu1 %504 }
 0x133   : > { %1117 = vset.pattern.permute.xlu1 %v1145_v29 }
 0x134   : > { %716 = vperm.xlu1 %1117, %v1227_v11   ;;  %v519_v11 = vmul.f32 0.0625, %v505_v3 }
 0x136   : > { %v567_v49 = vmul.f32 %v519_v11, %v519_v11  ;;  %v591_v31 = vsub.f32 %v1293_v46, %v519_v11 }
 0x138   : > { %720 = vperm.xlu1 %1117, %v1233_v12  }
 0x13c   : > { %736 = vperm.xlu1 %1117, %v1268_v18  }
 0x142   : > { %v499_v15 = vpop.xlane.xlu1 %498 }
 0x143   : > { %v1436_v3 = vmul.f32 0.0625, %v499_v15 }
 0x145   : > { %v565_v46 = vmul.f32 %v1436_v3, %v1436_v3 }
 0x154   : > { %v493_v8 = vpop.xlane.xlu0 %492 }
 0x155   : > { %v515_v41 = vmul.f32 0.0625, %v493_v8 }
 0x157   : > { %v563_v45 = vmul.f32 %v515_v41, %v515_v41  ;;  %v587_v25 = vsub.f32 %v1310_v28, %v515_v41 }
 0x158   : > { %v496_v37 = vpop.xlane.xlu0 %495 }
 0x159   : > { %v1416_v57 = vmul.f32 0.0625, %v496_v37 }
 0x15b   : > { %v564_v1 = vmul.f32 %v1416_v57, %v1416_v57 }
 0x15d   : > { %v1406_v9 = vpop.xlane.xlu1 %501 }
 0x15e   : > { %v1447_v15 = vmul.f32 0.0625, %v1406_v9 }
 0x161   : > { %v533_v16 = vpop.xlane.xlu1 %532 }
 0x162   : > { %v508_v38 = vpop.xlane.xlu0 %507  ;;  %v555_v43 = vmul.f32 0.0625, %v533_v16 }
 0x163   : > { %v1418_v59 = vmul.f32 0.0625, %v508_v38 }
 0x164   : > { %v571_v51 = vsub.f32 %v555_v43, %v563_v45 }
 0x165   : > { %v536_v2 = vpop.xlane.xlu1 %535  ;;  %v568_v5 = vmul.f32 %v1418_v59, %v1418_v59 }
 0x166   : > { %v511_v39 = vpop.xlane.xlu0 %510  ;;  %v579_v53 = vmax.f32 %v571_v51, 0.0  ;;  %v556_v50 = vmul.f32 0.0625, %v536_v2 }
 0x167   : > { %v1428_v22 = vmul.f32 0.0625, %v511_v39 }
 0x168   : > { %v595_v58 = vadd.f32 1e-05, %v579_v53  ;;  %v572_v32 = vsub.f32 %v556_v50, %v564_v1 }
 0x169   : > { %v539_v17 = vpop.xlane.xlu1 %538  ;;  %v569_v8 = vmul.f32 %v1428_v22, %v1428_v22 }
 0x16a   : > { %v1408_v40 = vpop.xlane.xlu0 %513  ;;  %1118 = vrsqrt.f32 %v595_v58  ;;  %v580_v10 = vmax.f32 %v572_v32, 0.0  ;;  %v557_v38 = vmul.f32 0.0625, %v539_v17 }
 0x16b   : > { %v1450_v43 = vmul.f32 0.0625, %v1408_v40  ;;  %v588_v40 = vsub.f32 %v1315_v30, %v1416_v57 }
 0x16c   : > { %v596_v21 = vadd.f32 1e-05, %v580_v10 }
 0x16d   : > { %v1410_v42 = vpop.xlane.xlu1 %541 }
 0x16e   : > { %v545_v12 = vpop.xlane.xlu0 %544 }
 0x16f   : > { %v559_v18 = vmul.f32 0.0625, %v545_v12  ;;  %v573_v12 = vsub.f32 %v557_v38, %v565_v46 }
 0x171   : > { %v621_v48 = vpop.permute.xlu1 %620  ;;  %v575_v52 = vsub.f32 %v559_v18, %v567_v49  ;;  %v558_v49 = vmul.f32 0.0625, %v1410_v42  ;;  %v581_v9 = vmax.f32 %v573_v12, 0.0 }
 0x172   : > { %v548_v33 = vpop.xlane.xlu0 %547 }
 0x173   : > { %v583_v47 = vmax.f32 %v575_v52, 0.0  ;;  %v560_v0 = vmul.f32 0.0625, %v548_v33  ;;  %v566_v52 = vmul.f32 %v1447_v15, %v1447_v15  ;;  %v597_v32 = vadd.f32 1e-05, %v581_v9 }
 0x174   : > { %v1119_v23 = vpop.eup %1118 }
 0x175   : > { %v1412_v26 = vpop.permute.xlu1 %624  ;;  %v599_v62 = vadd.f32 1e-05, %v583_v47  ;;  %v576_v6 = vsub.f32 %v560_v0, %v568_v5  ;;  %v611_v37 = vmul.f32 %v1119_v23, %v587_v25  ;;  %v574_v50 = vsub.f32 %v558_v49, %v566_v52 }
 0x176   : > { %v551_v54 = vpop.xlane.xlu0 %550 }
 0x177   : > { %1120 = vrsqrt.f32 %v599_v62  ;;  %v584_v14 = vmax.f32 %v576_v6, 0.0  ;;  %v561_v19 = vmul.f32 0.0625, %v551_v54  ;;  %v651_v41 = vmul.f32 %v621_v48, %v611_v37 }
 0x178   : > { %1122 = vrsqrt.f32 %v596_v21  ;;  %v570_v54 = vmul.f32 %v1450_v43, %v1450_v43  ;;  %v582_v6 = vmax.f32 %v574_v50, 0.0 }
 0x179   : > { %v1414_v56 = vpop.permute.xlu1 %640  ;;  %v600_v29 = vadd.f32 1e-05, %v584_v14  ;;  %v577_v2 = vsub.f32 %v561_v19, %v569_v8 }
 0x17a   : > { %v554_v4 = vpop.xlane.xlu0 %553  ;;  %v598_v14 = vadd.f32 1e-05, %v582_v6 }
 0x17b   : > { %1124 = vrsqrt.f32 %v600_v29  ;;  %v585_v18 = vmax.f32 %v577_v2, 0.0  ;;  %v562_v33 = vmul.f32 0.0625, %v554_v4  ;;  %v592_v4 = vsub.f32 %v1335_v55, %v1418_v59 }
 0x17d   : > { %v661_v63 = vpop.permute.xlu1 %660  ;;  %v601_v58 = vadd.f32 1e-05, %v585_v18  ;;  %v578_v1 = vsub.f32 %v562_v33, %v570_v54 }
 0x17e   : > { %v691_v17 = vadd.f32 %v661_v63, %v651_v41 }
 0x17f   : > { %1126 = vrsqrt.f32 %v601_v58  ;;  %v586_v30 = vmax.f32 %v578_v1, 0.0 }
 0x180   : > { %vm699_vm1 = vcmp.ge.f32.partialorder %v691_v17, 0.0  ;;  %1128 = vrsqrt.f32 %v597_v32 }
 0x181   : > { %v677_v35 = vpop.permute.xlu1 %676  ;;  %v1121_v27 = vpop.eup %1120  ;;  %v602_v55 = vadd.f32 1e-05, %v586_v30  ;;  %1130 = vrsqrt.f32 %v598_v14 }
 0x182   : > { %v637_v7 = vpop.permute.xlu0 %636  ;;  %v615_v16 = vmul.f32 %v1121_v27, %v591_v31  ;;  %v1123_v47 = vpop.eup %1122  ;;  %v593_v31 = vsub.f32 %v1344_v34, %v1428_v22 }
 0x183   : > { %v612_v5 = vmul.f32 %v1123_v47, %v588_v40  ;;  %1132 = vrsqrt.f32 %v602_v55  ;;  %v898_v55 = vld [vmem:[%s1492_s25 + $0x28] sm:$0xff] }
 0x184   : > { %v655_v11 = vmul.f32 %v637_v7, %v615_v16  ;;  %v589_v16 = vsub.f32 %v1300_v60, %v1436_v3  ;;  %v594_v60 = vsub.f32 %v1351_v61, %v1450_v43 }
 0x185   : > { %v1424_v13 = vpop.permute.xlu1 %664  ;;  %v1125_v63 = vpop.eup %1124  ;;  %v652_v10 = vmul.f32 %v1412_v26, %v612_v5 }
 0x186   : > { %v1426_v20 = vpop.permute.xlu0 %648  ;;  %v695_v53 = vadd.f32 %v677_v35, %v655_v11  ;;  %v616_v7 = vmul.f32 %v1125_v63, %v592_v4 }
 0x187   : > { %v692_v23 = vadd.f32 %v1424_v13, %v652_v10  ;;  %v893_v10 = vld [vmem:[%s1492_s25] sm:$0xff] }
 0x188   : > { %vm703_vm2 = vcmp.ge.f32.partialorder %v695_v53, 0.0  ;;  %v656_v21 = vmul.f32 %v1414_v56, %v616_v7 }
 0x189   : > { %v1430_v24 = vpop.permute.xlu1 %680  ;;  %vm700_vm3 = vcmp.ge.f32.partialorder %v692_v23, 0.0  ;;  %v1127_v29 = vpop.eup %1126 }
 0x18a   : > { %v696_v25 = vadd.f32 %v1430_v24, %v656_v21  ;;  %v617_v56 = vmul.f32 %v1127_v29, %v593_v31  ;;  %v1129_v13 = vpop.eup %1128 }
 0x18b   : > { %v1434_v36 = vpop.permute.xlu0 %668  ;;  %v613_v46 = vmul.f32 %v1129_v13, %v589_v16  ;;  %v1131_v11 = vpop.eup %1130  ;;  %v895_v16 = vld [vmem:[%s1492_s25 + $0x10] sm:$0xff] }
 0x18c   : > { %vm704_vm4 = vcmp.ge.f32.partialorder %v696_v25, 0.0 }
 0x18d   : > { %v1133_v12 = vpop.eup %1132 }
 0x18e   : > { %v1440_v39 = vpop.permute.xlu1 %628 }
 0x18f   : > { %v1442_v28 = vpop.permute.xlu0 %688  ;;  %v653_v34 = vmul.f32 %v1440_v39, %v613_v46  ;;  %v900_v46 = vld [vmem:[%s1492_s25 + $0x38] sm:$0xff] }
 0x191   : > { %v693_v49 = vadd.f32 %v1434_v36, %v653_v34  ;;  %v899_v34 = vld [vmem:[%s1492_s25 + $0x30] sm:$0xff] }
 0x192   : > { %v645_v45 = vpop.permute.xlu1 %644 }
 0x193   : > { %v657_v38 = vmul.f32 %v645_v45, %v617_v56  ;;  %v618_v45 = vmul.f32 %v1133_v12, %v594_v60  ;;  %vm701_vm6 = vcmp.ge.f32.partialorder %v693_v49, 0.0 }
 0x194   : > { %v709_v51 = vpop.permute.xlu0 %708 }
 0x195   : > { %v739_v48 = vmul.f32 %v709_v51, %v691_v17 }
 0x197   : > { %v725_v62 = vpop.permute.xlu1 %724  ;;  %v747_v42 = vsel %vm699_vm1, %v691_v17, %v739_v48  ;;  %v590_v17 = vsub.f32 %v1325_v44, %v1447_v15 }
 0x198   : > { %v743_v0 = vmul.f32 %v725_v62, %v695_v53  ;;  %1062 = vmatprep.mubr.msk.f32.mxu0 %vm490_vm0, %v747_v42  ;;  %v733_v2 = vpop.permute.xlu0 %732 }
 0x199   : > { %v614_v33 = vmul.f32 %v1131_v11, %v590_v17 }
 0x19a   : > { %v751_v35 = vsel %vm703_vm2, %v695_v53, %v743_v0  ;;  %v658_v53 = vmul.f32 %v1426_v20, %v618_v45  ;;  %v1035_v20 = vld [vmem:[%s1531_s5] ss:$0 sm:$0xff] }
 0x19b   : > { %1068 = vmatprep.mubr.msk.f32.mxu1 %vm490_vm0, %v751_v35 }
 0x19c   : > { %v633_v57 = vpop.permute.xlu1 %632  ;;  %v698_v61 = vadd.f32 %v1442_v28, %v658_v53 }
 0x19d   : > { %v654_v51 = vmul.f32 %v633_v57, %v614_v33  ;;  %v894_v57 = vld [vmem:[%s1492_s25 + $0x8] sm:$0xff] }
 0x19e   : > { %vm706_vm8 = vcmp.ge.f32.partialorder %v698_v61, 0.0 }
 0x1a1   : > { %v713_v59 = vpop.permute.xlu1 %712 }
 0x1a2   : > { %v740_v27 = vmul.f32 %v713_v59, %v692_v23 }
 0x1a4   : > { %v748_v19 = vsel %vm700_vm3, %v692_v23, %v740_v27 }
 0x1a5   : > { %v729_v26 = vpop.permute.xlu1 %728  ;;  %1063 = vmatmul.mubr.msk.f32.vlgmr.msra.gmra.mrb[0].mxu0 %vm490_vm0, %v748_v19 }
 0x1a6   : > { %v744_v8 = vmul.f32 %v729_v26, %v696_v25 }
 0x1a8   : > { %v752_v37 = vsel %vm704_vm4, %v696_v25, %v744_v8  ;;  %v897_v25 = vld [vmem:[%s1492_s25 + $0x20] sm:$0xff] }
 0x1a9   : > { %1069 = vmatmul.mubr.msk.f32.vlgmr.msra.gmra.mrb[0].mxu1 %vm490_vm0, %v752_v37  ;;  %v896_v37 = vld [vmem:[%s1492_s25 + $0x18] sm:$0xff] }
 0x1aa   : > { %v685_v24 = vpop.permute.xlu1 %684 }
 0x1ab   : > { %v697_v41 = vadd.f32 %v685_v24, %v657_v38 }
 0x1ad   : > { %vm705_vm5 = vcmp.ge.f32.partialorder %v697_v41, 0.0  ;;  %v745_v22 = vmul.f32 %v733_v2, %v697_v41 }
 0x1ae   : > { %v673_v18 = vpop.permute.xlu1 %672 }
 0x1af   : > { %v753_v3 = vsel %vm705_vm5, %v697_v41, %v745_v22  ;;  %v694_v48 = vadd.f32 %v673_v18, %v654_v51 }
 0x1b0   : > { %1071 = vmatprep.mubr.msk.f32.mxu1 %vm490_vm0, %v753_v3 }
 0x1b1   : > { %vm702_vm7 = vcmp.ge.f32.partialorder %v694_v48, 0.0 }
 0x1b3   : > { %v717_v52 = vpop.permute.xlu1 %716 }
 0x1b4   : > { %v741_v39 = vmul.f32 %v717_v52, %v693_v49 }
 0x1b6   : > { %v749_v47 = vsel %vm701_vm6, %v693_v49, %v741_v39 }
 0x1b7   : > { %v721_v9 = vpop.permute.xlu1 %720  ;;  %1065 = vmatprep.mubr.msk.f32.mxu0 %vm490_vm0, %v749_v47 }
 0x1b8   : > { %v742_v44 = vmul.f32 %v721_v9, %v694_v48 }
 0x1ba   : > { %v750_v15 = vsel %vm702_vm7, %v694_v48, %v742_v44 }
 0x1bb   : > { %v737_v43 = vpop.permute.xlu1 %736  ;;  %1066 = vmatmul.mubr.msk.f32.gmra.mrb[2].mxu0 %vm490_vm0, %v750_v15 }
 0x1bc   : > { %v746_v36 = vmul.f32 %v737_v43, %v698_v61 }
 0x1be   : > { %v754_v54 = vsel %vm706_vm8, %v698_v61, %v746_v36 }
 0x1bf   : > { %1072 = vmatmul.mubr.msk.f32.gmra.mrb[2].mxu1 %vm490_vm0, %v754_v54 }
 0x278   : > { %v1064_v58 = vpop.f32.mrb[0].mxu0 }
 0x279   : > { %v860_v40 = vadd.f32 %v1064_v58, %v1035_v20  ;;  %v854_v50 = vpop.f32.mrb[1].mxu0 }
 0x27a   : > { %v855_v62 = vadd.f32 %v1035_v20, %v854_v50 }
 0x27b   : > { %919 = vrot.lane.b32.xlu1 %v860_v40, %s1146_s19  ;;  %v902_v14 = vmul.f32 %v894_v57, %v860_v40 }
 0x27c   : > { %v1070_v28 = vpop.f32.mrb[0].mxu1  ;;  %917 = vrot.lane.b32.xlu0 %v855_v62, %s1146_s19  ;;  %v901_v23 = vmul.f32 %v893_v10, %v855_v62 }
 0x27d   : > { %v880_v42 = vadd.f32 %v1070_v28, %v1035_v20  ;;  %v874_v63 = vpop.f32.mrb[1].mxu1 }
 0x27e   : > { %v875_v1 = vadd.f32 %v1035_v20, %v874_v63 }
 0x27f   : > { %927 = vrot.lane.b32.xlu1 %v880_v42, %s1146_s19  ;;  %v906_v19 = vmul.f32 %v898_v55, %v880_v42 }
 0x280   : > { %925 = vrot.lane.b32.xlu0 %v875_v1, %s1146_s19  ;;  %v905_v26 = vmul.f32 %v897_v25, %v875_v1 }
 0x28e   : > { %v1067_v0 = vpop.f32.mrb[2].mxu0 }
 0x28f   : > { %v870_v4 = vadd.f32 %v1067_v0, %v1035_v20  ;;  %v864_v5 = vpop.f32.mrb[3].mxu0 }
 0x290   : > { %v865_v32 = vadd.f32 %v1035_v20, %v864_v5 }
 0x291   : > { %923 = vrot.lane.b32.xlu1 %v870_v4, %s1146_s19  ;;  %v904_v38 = vmul.f32 %v896_v37, %v870_v4 }
 0x292   : > { %921 = vrot.lane.b32.xlu0 %v865_v32, %s1146_s19  ;;  %v1073_v35 = vpop.f32.mrb[2].mxu1  ;;  %v903_v2 = vmul.f32 %v895_v16, %v865_v32 }
 0x293   : > { %v890_v6 = vadd.f32 %v1073_v35, %v1035_v20  ;;  %v884_v7 = vpop.f32.mrb[3].mxu1 }
 0x294   : > { %v885_v30 = vadd.f32 %v1035_v20, %v884_v7 }
 0x295   : > { %931 = vrot.lane.b32.xlu1 %v890_v6, %s1146_s19  ;;  %v908_v12 = vmul.f32 %v900_v46, %v890_v6 }
 0x296   : > { %929 = vrot.lane.b32.xlu0 %v885_v30, %s1146_s19  ;;  %v907_v17 = vmul.f32 %v899_v34, %v885_v30 }
 0x2ed   : > { %v920_v21 = vpop.permute.xlu1 %919 }
 0x2ee   : > { %v942_v59 = vadd.f32 %v920_v21, %v902_v14  ;;  %v918_v27 = vpop.permute.xlu0 %917 }
 0x2ef   : > { %v941_v29 = vadd.f32 %v918_v27, %v901_v23 }
 0x2f0   : > { %951 = vst.msk [vmem:[%s1499_s28 + $0x8] sm:$0xff] %vm949_vm9, %v942_v59 }
 0x2f1   : > { %950 = vst.msk [vmem:[%s1499_s28] sm:$0xff] %vm949_vm9, %v941_v29  ;;  %v928_v31 = vpop.permute.xlu1 %927 }
 0x2f2   : > { %v946_v8 = vadd.f32 %v928_v31, %v906_v19  ;;  %v926_v56 = vpop.permute.xlu0 %925 }
 0x2f3   : > { %v945_v13 = vadd.f32 %v926_v56, %v905_v26 }
 0x2f4   : > { %955 = vst.msk [vmem:[%s1499_s28 + $0x28] sm:$0xff] %vm949_vm9, %v946_v8 }
 0x2f5   : > { %954 = vst.msk [vmem:[%s1499_s28 + $0x20] sm:$0xff] %vm949_vm9, %v945_v13 }
 0x303   : > { %v924_v24 = vpop.permute.xlu1 %923 }
 0x304   : > { %v944_v41 = vadd.f32 %v924_v24, %v904_v38  ;;  %v922_v11 = vpop.permute.xlu0 %921 }
 0x305   : > { %v943_v22 = vadd.f32 %v922_v11, %v903_v2 }
 0x306   : > { %953 = vst.msk [vmem:[%s1499_s28 + $0x18] sm:$0xff] %vm949_vm9, %v944_v41 }
 0x307   : > { %952 = vst.msk [vmem:[%s1499_s28 + $0x10] sm:$0xff] %vm949_vm9, %v943_v22  ;;  %v932_v18 = vpop.permute.xlu1 %931 }
 0x308   : > { %v948_v60 = vadd.f32 %v932_v18, %v908_v12  ;;  %v930_v3 = vpop.permute.xlu0 %929 }
 0x309   : > { %v947_v45 = vadd.f32 %v930_v3, %v907_v17 }
 0x30a   : > { %957 = vst.msk [vmem:[%s1499_s28 + $0x38] sm:$0xff] %vm949_vm9, %v948_v60 }
 0x30b   : > { %956 = vst.msk [vmem:[%s1499_s28 + $0x30] sm:$0xff] %vm949_vm9, %v947_v45 }
 0x30c PF: > { %s16_s21 = sadd.s32 1, %s1140_s21  }
 0x30d   : > { %p13_p4 = scmp.ge.s32.totalorder %s16_s21, 4  }
 0x30f   :  { %15 = sbr.rel (!%p13_p4) target bundleno = 1 (0x1), region = 77 }

</bundles_post_ra>
